<compile_context>
chip_gen: v6e
topology: v6e:2x2x1
jax: 0.10.0
libtpu: 0.0.40
codegen_flags: <defaults>
</compile_context>

<pallas_src>
import math

import jax
import jax.numpy as jnp
from jax.experimental import pallas as pl
from jax.experimental.pallas import tpu as pltpu

# ---- small, module-consistent config -----------------------------------
SEQ = 8            # max_seq_length
EMB = 32           # embedding_size
VOCAB = 64         # num_of_vocabulary
NUM_DECODERS = 2   # num_of_decoders
FFN = 4 * EMB
LN_EPS = 1e-5
VPAD = 128                 # lane-dense padded vocab width for header/softmax output
EP_ROWS = VOCAB + SEQ      # stacked [embedding; pos_emb] rows
EP_PAD = 80                # EP_ROWS padded to a multiple of 16 (bf16 sublane tile)
NEG_INF = -1e30


def _vmem():
    return pl.BlockSpec(memory_space=pltpu.MemorySpace.VMEM)


# ---- shared helper (pure jnp; used in-kernel and in the reference) --------
def _layer_norm(x, gamma, beta):
    mean = jnp.mean(x, axis=-1, keepdims=True)
    var = jnp.mean((x - mean) ** 2, axis=-1, keepdims=True)
    return (x - mean) * jax.lax.rsqrt(var + LN_EPS) * gamma + beta


# ---- the fused Pallas kernel ----------------------------------------------
def next_token_kernel(tok_ref, w_ref, tab_ref, p_ref, out_ref):
    tab = tab_ref[...]                       # bf16 [EP_PAD + EMB, 128]
    par = p_ref[...]                         # f32  [L*8 + 1, 128]

    # --- embedding gather + positional add fused into ONE one-hot MXU push ---
    # column c < VOCAB selects vocab row tok[s]; column VOCAB+s selects pos row s.
    # (token ids are assumed in [0, VOCAB) — same assumption as nn.Embedding)
    tok = tok_ref[...]                                               # [S, 1] int32
    col = jax.lax.broadcasted_iota(jnp.int32, (SEQ, EP_PAD), 1)
    row = jax.lax.broadcasted_iota(jnp.int32, (SEQ, EP_PAD), 0)
    onehot = jnp.logical_or(col == tok, col == VOCAB + row).astype(jnp.bfloat16)
    x = jnp.dot(onehot, tab[0:EP_PAD, 0:EMB],
                preferred_element_type=jnp.float32)                  # [S, E] f32

    # --- causal mask hoisted out of the layer loop (computed once) ---
    rr = jax.lax.broadcasted_iota(jnp.int32, (SEQ, SEQ), 0)
    cc = jax.lax.broadcasted_iota(jnp.int32, (SEQ, SEQ), 1)
    causal = cc <= rr
    ct_last = (((1,), (1,)), ((), ()))        # contract last dims  ==  A @ B^T

    for l in range(NUM_DECODERS):             # static unroll, L = 2
        last = l == NUM_DECODERS - 1
        wl = w_ref[l]                         # bf16 [E, 3E | E | FFN | FFN]
        blns = par[8 * l:8 * l + 8, :]        # f32  [8, 128] packed biases / LN
        bqkv = blns[0:1, 0:3 * EMB]
        bo   = blns[1:2, 0:EMB]
        b1   = blns[2:3, 0:FFN]
        b2   = blns[3:4, 0:EMB]
        ln1g = blns[4:5, 0:EMB]
        ln1b = blns[5:6, 0:EMB]
        ln2g = blns[6:7, 0:EMB]
        ln2b = blns[7:8, 0:EMB]

        # fused QKV projection (1/sqrt(E) pre-folded into Wq / bq at init)
        qkv = jnp.dot(x.astype(jnp.bfloat16), wl[:, 0:3 * EMB],
                      preferred_element_type=jnp.float32) + bqkv     # [S, 3E] f32
        q = qkv[:, 0:EMB]
        k = qkv[:, EMB:2 * EMB]
        v = qkv[:, 2 * EMB:3 * EMB]

        if last:
            # header only consumes the last position -> last-row query only,
            # and the last row attends to everything, so no causal mask needed.
            q = q[SEQ - 1:SEQ, :]
        s = jax.lax.dot_general(q.astype(jnp.bfloat16), k.astype(jnp.bfloat16),
                                ct_last, preferred_element_type=jnp.float32)
        if not last:
            s = jnp.where(causal, s, NEG_INF)
        s = s - jnp.max(s, axis=-1, keepdims=True)
        p = jnp.exp(s)
        p = p * pl.reciprocal(jnp.sum(p, axis=-1, keepdims=True), approx=True)

        attn = jnp.dot(p.astype(jnp.bfloat16), v.astype(jnp.bfloat16),
                       preferred_element_type=jnp.float32)
        attn = jnp.dot(attn.astype(jnp.bfloat16), wl[:, 3 * EMB:4 * EMB],
                       preferred_element_type=jnp.float32) + bo

        xr = x[SEQ - 1:SEQ, :] if last else x
        x = _layer_norm(xr + attn, ln1g, ln1b)

        # position-wise feed-forward (w2 stored transposed -> contract last dims)
        h = jnp.dot(x.astype(jnp.bfloat16), wl[:, 4 * EMB:4 * EMB + FFN],
                    preferred_element_type=jnp.float32) + b1
        h = jnp.maximum(h, 0.0)
        h = jax.lax.dot_general(h.astype(jnp.bfloat16),
                                wl[:, 4 * EMB + FFN:4 * EMB + 2 * FFN],
                                ct_last, preferred_element_type=jnp.float32) + b2
        x = _layer_norm(x + h, ln2g, ln2b)    # [1, E] after the last layer

    # --- header + exact softmax (lane-dense 128 output) ---
    # pad lanes carry bias = -1e30 -> exp() == 0, softmax only over real VOCAB lanes
    logits = jnp.dot(x.astype(jnp.bfloat16), tab[EP_PAD:EP_PAD + EMB, :],
                     preferred_element_type=jnp.float32) \
        + par[NUM_DECODERS * 8:NUM_DECODERS * 8 + 1, :]              # [1, 128]
    logits = logits - jnp.max(logits, axis=-1, keepdims=True)
    e = jnp.exp(logits)
    out_ref[...] = e * pl.reciprocal(jnp.sum(e, axis=-1, keepdims=True))  # exact


# ---- wrapper --------------------------------------------------------------
def next_token_forward(tokens, params):
    tok2d = tokens.reshape(SEQ, 1).astype(jnp.int32)
    args = (tok2d, params["wslab"], params["tabslab"], params["pslab"])
    probs_pad = pl.pallas_call(
        next_token_kernel,
        out_shape=jax.ShapeDtypeStruct((1, VPAD), jnp.float32),
        in_specs=[_vmem() for _ in args],
        out_specs=_vmem(),
    )(*args)
    return probs_pad[:, :VOCAB]                                      # [1, V]


# ---- parameter construction -----------------------------------------------
def sinusoidal_positional_embeddings(seq_len, emb):
    pos = jnp.arange(seq_len, dtype=jnp.float32)[:, None]
    i = jnp.arange(emb // 2, dtype=jnp.float32)[None, :]
    angle = pos / jnp.power(10000.0, 2.0 * i / emb)
    pe = jnp.zeros((seq_len, emb), jnp.float32)
    pe = pe.at[:, 0::2].set(jnp.sin(angle))
    pe = pe.at[:, 1::2].set(jnp.cos(angle))
    return pe


def init_params(key):
    keys = jax.random.split(key, 2 + NUM_DECODERS)
    scale = 0.02
    embedding = jax.random.normal(keys[0], (VOCAB, EMB), jnp.float32)
    w_head = scale * jax.random.normal(keys[1], (EMB, VOCAB), jnp.float32)
    b_head = jnp.zeros((VOCAB,), jnp.float32)
    pos_emb = sinusoidal_positional_embeddings(SEQ, EMB)

    wq, wk, wv, wo, w1, w2 = [], [], [], [], [], []
    for l in range(NUM_DECODERS):
        k = jax.random.split(keys[2 + l], 6)
        wq.append(scale * jax.random.normal(k[0], (EMB, EMB), jnp.float32))
        wk.append(scale * jax.random.normal(k[1], (EMB, EMB), jnp.float32))
        wv.append(scale * jax.random.normal(k[2], (EMB, EMB), jnp.float32))
        wo.append(scale * jax.random.normal(k[3], (EMB, EMB), jnp.float32))
        w1.append(scale * jax.random.normal(k[4], (EMB, FFN), jnp.float32))
        w2.append(scale * jax.random.normal(k[5], (FFN, EMB), jnp.float32))
    wq, wk, wv = jnp.stack(wq), jnp.stack(wk), jnp.stack(wv)
    wo, w1, w2 = jnp.stack(wo), jnp.stack(w1), jnp.stack(w2)

    inv_sqrt_e = 1.0 / math.sqrt(EMB)

    # --- bf16 weight slab: [L, E, wqkv(96) | wo(32) | w1(128) | w2^T(128)] ---
    wqkv = jnp.concatenate([wq * inv_sqrt_e, wk, wv], axis=-1)   # scale folded into Wq
    w2t = jnp.swapaxes(w2, 1, 2)                                 # [L, E, FFN]
    wslab = jnp.concatenate([wqkv, wo, w1, w2t], axis=-1).astype(jnp.bfloat16)

    # --- bf16 table slab: [embedding; pos_emb] rows, then header-weight rows ---
    embpos = jnp.concatenate([embedding, pos_emb], axis=0)       # [V+S, E]
    embpos = jnp.pad(embpos, ((0, EP_PAD - EP_ROWS), (0, VPAD - EMB)))
    w_head_pad = jnp.pad(w_head, ((0, 0), (0, VPAD - VOCAB)))
    tabslab = jnp.concatenate([embpos, w_head_pad],
                              axis=0).astype(jnp.bfloat16)       # [112, 128]

    # --- f32 small-params slab: L*8 rows of biases/LN params + 1 header-bias row
    def pad128(v):
        return jnp.pad(v, ((0, 0), (0, VPAD - v.shape[-1])))

    bqkv_b = jnp.zeros((NUM_DECODERS, 3 * EMB), jnp.float32)
    bqkv_b = bqkv_b.at[:, :EMB].multiply(inv_sqrt_e)             # fold scale into bq too
    bo_b = jnp.zeros((NUM_DECODERS, EMB), jnp.float32)
    b1_b = jnp.zeros((NUM_DECODERS, FFN), jnp.float32)
    b2_b = jnp.zeros((NUM_DECODERS, EMB), jnp.float32)
    ln1g = jnp.ones((NUM_DECODERS, EMB), jnp.float32)
    ln1b = jnp.zeros((NUM_DECODERS, EMB), jnp.float32)
    ln2g = jnp.ones((NUM_DECODERS, EMB), jnp.float32)
    ln2b = jnp.zeros((NUM_DECODERS, EMB), jnp.float32)
    blns = jnp.stack([pad128(bqkv_b), pad128(bo_b), pad128(b1_b), pad128(b2_b),
                      pad128(ln1g), pad128(ln1b), pad128(ln2g), pad128(ln2b)],
                     axis=1).reshape(NUM_DECODERS * 8, VPAD)     # [16, 128]
    b_head_row = jnp.concatenate(
        [b_head, jnp.full((VPAD - VOCAB,), NEG_INF, jnp.float32)])[None, :]
    pslab = jnp.concatenate([blns, b_head_row], axis=0)          # [17, 128]

    return {
        "wslab": wslab,
        "tabslab": tabslab,
        "pslab": pslab,
        # raw f32 master weights, only for the pure-JAX reference check
        "_raw": dict(embedding=embedding, pos_emb=pos_emb,
                     wq=wq, wk=wk, wv=wv, wo=wo, w1=w1, w2=w2,
                     w_head=w_head, b_head=b_head),
    }


# ---- pure-JAX reference (correctness oracle, f32 master weights) ----------
def reference_forward(tokens, params):
    raw = params["_raw"]
    x = raw["embedding"][tokens] + raw["pos_emb"]
    causal = jnp.arange(SEQ)[None, :] <= jnp.arange(SEQ)[:, None]
    for l in range(NUM_DECODERS):
        q = x @ raw["wq"][l]
        k = x @ raw["wk"][l]
        v = x @ raw["wv"][l]
        s = (q @ k.T) / math.sqrt(EMB)
        s = jnp.where(causal, s, NEG_INF)
        p = jax.nn.softmax(s, axis=-1)
        attn = (p @ v) @ raw["wo"][l]
        x = _layer_norm(x + attn, 1.0, 0.0)
        h = jnp.maximum(x @ raw["w1"][l], 0.0) @ raw["w2"][l]
        x = _layer_norm(x + h, 1.0, 0.0)
    logits = x[-1] @ raw["w_head"] + raw["b_head"]
    return jax.nn.softmax(logits)[None, :]


if __name__ == "__main__":
    key = jax.random.PRNGKey(0)
    k_tok, k_par = jax.random.split(key)
    tokens = jax.random.randint(k_tok, (SEQ,), 0, VOCAB, dtype=jnp.int32)
    params = init_params(k_par)

    fwd = jax.jit(lambda t: next_token_forward(t, params))
    out = jax.block_until_ready(fwd(tokens))

    assert out.shape == (1, VOCAB)
    assert out.dtype == jnp.float32
    assert bool(jnp.isfinite(out).all())
    assert abs(float(out.sum()) - 1.0) < 1e-3          # softmax row sums to 1

    ref = reference_forward(tokens, params)
    assert bool(jnp.allclose(out, ref, rtol=2e-2, atol=1e-3)), \
        float(jnp.max(jnp.abs(out - ref)))
    print("KERNEL_OK")
</pallas_src>

<mosaic_0001>
module attributes {stable_mosaic.version = 11 : i64} {
  func.func @next_token_kernel(%arg0: memref<8x1xi32, #tpu.memory_space<vmem>>, %arg1: memref<2x32x384xbf16, #tpu.memory_space<vmem>>, %arg2: memref<112x128xbf16, #tpu.memory_space<vmem>>, %arg3: memref<17x128xf32, #tpu.memory_space<vmem>>, %arg4: memref<1x128xf32, #tpu.memory_space<vmem>>) attributes {dimension_semantics = [], scalar_prefetch = 0 : i64, scratch_operands = 0 : i64, tpu.core_type = #tpu.core_type<tc>} {
    %c0 = arith.constant 0 : index
    %c0_0 = arith.constant 0 : index
    %0 = vector.load %arg2[%c0, %c0_0] : memref<112x128xbf16, #tpu.memory_space<vmem>>, vector<112x128xbf16>
    %c0_1 = arith.constant 0 : index
    %c0_2 = arith.constant 0 : index
    %1 = vector.load %arg3[%c0_1, %c0_2] : memref<17x128xf32, #tpu.memory_space<vmem>>, vector<17x128xf32>
    %c0_3 = arith.constant 0 : index
    %c0_4 = arith.constant 0 : index
    %2 = vector.load %arg0[%c0_3, %c0_4] : memref<8x1xi32, #tpu.memory_space<vmem>>, vector<8x1xi32>
    %3 = tpu.iota {dimensions = array<i32: 1>} : vector<8x80xi32>
    %4 = tpu.iota {dimensions = array<i32: 0>} : vector<8x80xi32>
    %5 = vector.broadcast %2 : vector<8x1xi32> to vector<8x80xi32>
    %6 = arith.cmpi eq, %3, %5 : vector<8x80xi32>
    %c64_i32 = arith.constant 64 : i32
    %7 = vector.broadcast %c64_i32 : i32 to vector<8x80xi32>
    %8 = arith.addi %7, %4 : vector<8x80xi32>
    %9 = arith.cmpi eq, %3, %8 : vector<8x80xi32>
    %10 = arith.ori %6, %9 : vector<8x80xi1>
    %11 = arith.extui %10 : vector<8x80xi1> to vector<8x80xi32>
    %12 = arith.sitofp %11 : vector<8x80xi32> to vector<8x80xf32>
    %13 = arith.truncf %12 : vector<8x80xf32> to vector<8x80xbf16>
    %14 = vector.extract_strided_slice %0 {offsets = [0, 0], sizes = [80, 32], strides = [1, 1]} : vector<112x128xbf16> to vector<80x32xbf16>
    %cst = arith.constant dense<0.000000e+00> : vector<8x32xf32>
    %15 = tpu.matmul %13, %14, %cst {dimension_numbers = #tpu.dot_dimension_numbers<[1], [0], [0], [1], [0, 0, 1, 1], [], []>} : vector<8x80xbf16>, vector<80x32xbf16>, vector<8x32xf32> -> vector<8x32xf32>
    %16 = tpu.iota {dimensions = array<i32: 0>} : vector<8x8xi32>
    %17 = tpu.iota {dimensions = array<i32: 1>} : vector<8x8xi32>
    %18 = arith.cmpi sle, %17, %16 : vector<8x8xi32>
    %c0_5 = arith.constant 0 : index
    %c0_6 = arith.constant 0 : index
    %c0_7 = arith.constant 0 : index
    %19 = vector.load %arg1[%c0_5, %c0_6, %c0_7] : memref<2x32x384xbf16, #tpu.memory_space<vmem>>, vector<1x32x384xbf16>
    %20 = vector.shape_cast %19 : vector<1x32x384xbf16> to vector<32x384xbf16>
    %21 = vector.extract_strided_slice %1 {offsets = [0, 0], sizes = [8, 128], strides = [1, 1]} : vector<17x128xf32> to vector<8x128xf32>
    %22 = vector.extract_strided_slice %21 {offsets = [0, 0], sizes = [1, 96], strides = [1, 1]} : vector<8x128xf32> to vector<1x96xf32>
    %23 = vector.extract_strided_slice %21 {offsets = [1, 0], sizes = [1, 32], strides = [1, 1]} : vector<8x128xf32> to vector<1x32xf32>
    %24 = vector.extract_strided_slice %21 {offsets = [2, 0], sizes = [1, 128], strides = [1, 1]} : vector<8x128xf32> to vector<1x128xf32>
    %25 = vector.extract_strided_slice %21 {offsets = [3, 0], sizes = [1, 32], strides = [1, 1]} : vector<8x128xf32> to vector<1x32xf32>
    %26 = vector.extract_strided_slice %21 {offsets = [4, 0], sizes = [1, 32], strides = [1, 1]} : vector<8x128xf32> to vector<1x32xf32>
    %27 = vector.extract_strided_slice %21 {offsets = [5, 0], sizes = [1, 32], strides = [1, 1]} : vector<8x128xf32> to vector<1x32xf32>
    %28 = vector.extract_strided_slice %21 {offsets = [6, 0], sizes = [1, 32], strides = [1, 1]} : vector<8x128xf32> to vector<1x32xf32>
    %29 = vector.extract_strided_slice %21 {offsets = [7, 0], sizes = [1, 32], strides = [1, 1]} : vector<8x128xf32> to vector<1x32xf32>
    %30 = arith.truncf %15 : vector<8x32xf32> to vector<8x32xbf16>
    %31 = vector.extract_strided_slice %20 {offsets = [0, 0], sizes = [32, 96], strides = [1, 1]} : vector<32x384xbf16> to vector<32x96xbf16>
    %cst_8 = arith.constant dense<0.000000e+00> : vector<8x96xf32>
    %32 = tpu.matmul %30, %31, %cst_8 {dimension_numbers = #tpu.dot_dimension_numbers<[1], [0], [0], [1], [0, 0, 1, 1], [], []>} : vector<8x32xbf16>, vector<32x96xbf16>, vector<8x96xf32> -> vector<8x96xf32>
    %33 = vector.broadcast %22 : vector<1x96xf32> to vector<8x96xf32>
    %34 = arith.addf %32, %33 : vector<8x96xf32>
    %35 = vector.extract_strided_slice %34 {offsets = [0, 0], sizes = [8, 32], strides = [1, 1]} : vector<8x96xf32> to vector<8x32xf32>
    %36 = vector.extract_strided_slice %34 {offsets = [0, 32], sizes = [8, 32], strides = [1, 1]} : vector<8x96xf32> to vector<8x32xf32>
    %37 = vector.extract_strided_slice %34 {offsets = [0, 64], sizes = [8, 32], strides = [1, 1]} : vector<8x96xf32> to vector<8x32xf32>
    %38 = arith.truncf %35 : vector<8x32xf32> to vector<8x32xbf16>
    %39 = arith.truncf %36 : vector<8x32xf32> to vector<8x32xbf16>
    %cst_9 = arith.constant dense<0.000000e+00> : vector<8x8xf32>
    %40 = tpu.matmul %38, %39, %cst_9 {dimension_numbers = #tpu.dot_dimension_numbers<[1], [1], [0], [0], [0, 0, 1, 0], [], []>} : vector<8x32xbf16>, vector<8x32xbf16>, vector<8x8xf32> -> vector<8x8xf32>
    %cst_10 = arith.constant -1.000000e+30 : f32
    %41 = vector.broadcast %cst_10 : f32 to vector<8x8xf32>
    %42 = arith.select %18, %40, %41 : vector<8x8xi1>, vector<8x8xf32>
    %cst_11 = arith.constant dense<0xFF800000> : vector<8xf32>
    %43 = vector.multi_reduction <maximumf>, %42, %cst_11 [1] : vector<8x8xf32> to vector<8xf32>
    %44 = vector.shape_cast %43 : vector<8xf32> to vector<8x1xf32>
    %45 = vector.broadcast %44 : vector<8x1xf32> to vector<8x8xf32>
    %46 = arith.subf %42, %45 : vector<8x8xf32>
    %47 = math.exp %46 : vector<8x8xf32>
    %cst_12 = arith.constant dense<0.000000e+00> : vector<8xf32>
    %48 = vector.multi_reduction <add>, %47, %cst_12 [1] : vector<8x8xf32> to vector<8xf32>
    %49 = vector.shape_cast %48 : vector<8xf32> to vector<8x1xf32>
    %50 = tpu.reciprocal %49 {approx = true} : vector<8x1xf32> -> vector<8x1xf32>
    %51 = vector.broadcast %50 : vector<8x1xf32> to vector<8x8xf32>
    %52 = arith.mulf %47, %51 : vector<8x8xf32>
    %53 = arith.truncf %52 : vector<8x8xf32> to vector<8x8xbf16>
    %54 = arith.truncf %37 : vector<8x32xf32> to vector<8x32xbf16>
    %cst_13 = arith.constant dense<0.000000e+00> : vector<8x32xf32>
    %55 = tpu.matmul %53, %54, %cst_13 {dimension_numbers = #tpu.dot_dimension_numbers<[1], [0], [0], [1], [0, 0, 1, 1], [], []>} : vector<8x8xbf16>, vector<8x32xbf16>, vector<8x32xf32> -> vector<8x32xf32>
    %56 = arith.truncf %55 : vector<8x32xf32> to vector<8x32xbf16>
    %57 = vector.extract_strided_slice %20 {offsets = [0, 96], sizes = [32, 32], strides = [1, 1]} : vector<32x384xbf16> to vector<32x32xbf16>
    %cst_14 = arith.constant dense<0.000000e+00> : vector<8x32xf32>
    %58 = tpu.matmul %56, %57, %cst_14 {dimension_numbers = #tpu.dot_dimension_numbers<[1], [0], [0], [1], [0, 0, 1, 1], [], []>} : vector<8x32xbf16>, vector<32x32xbf16>, vector<8x32xf32> -> vector<8x32xf32>
    %59 = vector.broadcast %23 : vector<1x32xf32> to vector<8x32xf32>
    %60 = arith.addf %58, %59 : vector<8x32xf32>
    %61 = arith.addf %15, %60 : vector<8x32xf32>
    %cst_15 = arith.constant dense<0.000000e+00> : vector<8xf32>
    %62 = vector.multi_reduction <add>, %61, %cst_15 [1] : vector<8x32xf32> to vector<8xf32>
    %63 = vector.shape_cast %62 : vector<8xf32> to vector<8x1xf32>
    %cst_16 = arith.constant 3.200000e+01 : f32
    %64 = vector.broadcast %cst_16 : f32 to vector<8x1xf32>
    %65 = arith.divf %63, %64 : vector<8x1xf32>
    %66 = vector.broadcast %65 : vector<8x1xf32> to vector<8x32xf32>
    %67 = arith.subf %61, %66 : vector<8x32xf32>
    %68 = arith.mulf %67, %67 : vector<8x32xf32>
    %cst_17 = arith.constant dense<0.000000e+00> : vector<8xf32>
    %69 = vector.multi_reduction <add>, %68, %cst_17 [1] : vector<8x32xf32> to vector<8xf32>
    %70 = vector.shape_cast %69 : vector<8xf32> to vector<8x1xf32>
    %cst_18 = arith.constant 3.200000e+01 : f32
    %71 = vector.broadcast %cst_18 : f32 to vector<8x1xf32>
    %72 = arith.divf %70, %71 : vector<8x1xf32>
    %73 = vector.broadcast %65 : vector<8x1xf32> to vector<8x32xf32>
    %74 = arith.subf %61, %73 : vector<8x32xf32>
    %cst_19 = arith.constant 9.99999974E-6 : f32
    %75 = vector.broadcast %cst_19 : f32 to vector<8x1xf32>
    %76 = arith.addf %72, %75 : vector<8x1xf32>
    %77 = math.rsqrt %76 : vector<8x1xf32>
    %78 = vector.broadcast %77 : vector<8x1xf32> to vector<8x32xf32>
    %79 = arith.mulf %74, %78 : vector<8x32xf32>
    %80 = vector.broadcast %26 : vector<1x32xf32> to vector<8x32xf32>
    %81 = arith.mulf %79, %80 : vector<8x32xf32>
    %82 = vector.broadcast %27 : vector<1x32xf32> to vector<8x32xf32>
    %83 = arith.addf %81, %82 : vector<8x32xf32>
    %84 = arith.truncf %83 : vector<8x32xf32> to vector<8x32xbf16>
    %85 = vector.extract_strided_slice %20 {offsets = [0, 128], sizes = [32, 128], strides = [1, 1]} : vector<32x384xbf16> to vector<32x128xbf16>
    %cst_20 = arith.constant dense<0.000000e+00> : vector<8x128xf32>
    %86 = tpu.matmul %84, %85, %cst_20 {dimension_numbers = #tpu.dot_dimension_numbers<[1], [0], [0], [1], [0, 0, 1, 1], [], []>} : vector<8x32xbf16>, vector<32x128xbf16>, vector<8x128xf32> -> vector<8x128xf32>
    %87 = vector.broadcast %24 : vector<1x128xf32> to vector<8x128xf32>
    %88 = arith.addf %86, %87 : vector<8x128xf32>
    %cst_21 = arith.constant 0.000000e+00 : f32
    %89 = vector.broadcast %cst_21 : f32 to vector<8x128xf32>
    %90 = arith.maximumf %88, %89 : vector<8x128xf32>
    %91 = arith.truncf %90 : vector<8x128xf32> to vector<8x128xbf16>
    %92 = vector.extract_strided_slice %20 {offsets = [0, 256], sizes = [32, 128], strides = [1, 1]} : vector<32x384xbf16> to vector<32x128xbf16>
    %cst_22 = arith.constant dense<0.000000e+00> : vector<8x32xf32>
    %93 = tpu.matmul %91, %92, %cst_22 {dimension_numbers = #tpu.dot_dimension_numbers<[1], [1], [0], [0], [0, 0, 1, 0], [], []>} : vector<8x128xbf16>, vector<32x128xbf16>, vector<8x32xf32> -> vector<8x32xf32>
    %94 = vector.broadcast %25 : vector<1x32xf32> to vector<8x32xf32>
    %95 = arith.addf %93, %94 : vector<8x32xf32>
    %96 = arith.addf %83, %95 : vector<8x32xf32>
    %cst_23 = arith.constant dense<0.000000e+00> : vector<8xf32>
    %97 = vector.multi_reduction <add>, %96, %cst_23 [1] : vector<8x32xf32> to vector<8xf32>
    %98 = vector.shape_cast %97 : vector<8xf32> to vector<8x1xf32>
    %cst_24 = arith.constant 3.200000e+01 : f32
    %99 = vector.broadcast %cst_24 : f32 to vector<8x1xf32>
    %100 = arith.divf %98, %99 : vector<8x1xf32>
    %101 = vector.broadcast %100 : vector<8x1xf32> to vector<8x32xf32>
    %102 = arith.subf %96, %101 : vector<8x32xf32>
    %103 = arith.mulf %102, %102 : vector<8x32xf32>
    %cst_25 = arith.constant dense<0.000000e+00> : vector<8xf32>
    %104 = vector.multi_reduction <add>, %103, %cst_25 [1] : vector<8x32xf32> to vector<8xf32>
    %105 = vector.shape_cast %104 : vector<8xf32> to vector<8x1xf32>
    %cst_26 = arith.constant 3.200000e+01 : f32
    %106 = vector.broadcast %cst_26 : f32 to vector<8x1xf32>
    %107 = arith.divf %105, %106 : vector<8x1xf32>
    %108 = vector.broadcast %100 : vector<8x1xf32> to vector<8x32xf32>
    %109 = arith.subf %96, %108 : vector<8x32xf32>
    %cst_27 = arith.constant 9.99999974E-6 : f32
    %110 = vector.broadcast %cst_27 : f32 to vector<8x1xf32>
    %111 = arith.addf %107, %110 : vector<8x1xf32>
    %112 = math.rsqrt %111 : vector<8x1xf32>
    %113 = vector.broadcast %112 : vector<8x1xf32> to vector<8x32xf32>
    %114 = arith.mulf %109, %113 : vector<8x32xf32>
    %115 = vector.broadcast %28 : vector<1x32xf32> to vector<8x32xf32>
    %116 = arith.mulf %114, %115 : vector<8x32xf32>
    %117 = vector.broadcast %29 : vector<1x32xf32> to vector<8x32xf32>
    %118 = arith.addf %116, %117 : vector<8x32xf32>
    %c1 = arith.constant 1 : index
    %c0_28 = arith.constant 0 : index
    %c0_29 = arith.constant 0 : index
    %119 = vector.load %arg1[%c1, %c0_28, %c0_29] : memref<2x32x384xbf16, #tpu.memory_space<vmem>>, vector<1x32x384xbf16>
    %120 = vector.shape_cast %119 : vector<1x32x384xbf16> to vector<32x384xbf16>
    %121 = vector.extract_strided_slice %1 {offsets = [8, 0], sizes = [8, 128], strides = [1, 1]} : vector<17x128xf32> to vector<8x128xf32>
    %122 = vector.extract_strided_slice %121 {offsets = [0, 0], sizes = [1, 96], strides = [1, 1]} : vector<8x128xf32> to vector<1x96xf32>
    %123 = vector.extract_strided_slice %121 {offsets = [1, 0], sizes = [1, 32], strides = [1, 1]} : vector<8x128xf32> to vector<1x32xf32>
    %124 = vector.extract_strided_slice %121 {offsets = [2, 0], sizes = [1, 128], strides = [1, 1]} : vector<8x128xf32> to vector<1x128xf32>
    %125 = vector.extract_strided_slice %121 {offsets = [3, 0], sizes = [1, 32], strides = [1, 1]} : vector<8x128xf32> to vector<1x32xf32>
    %126 = vector.extract_strided_slice %121 {offsets = [4, 0], sizes = [1, 32], strides = [1, 1]} : vector<8x128xf32> to vector<1x32xf32>
    %127 = vector.extract_strided_slice %121 {offsets = [5, 0], sizes = [1, 32], strides = [1, 1]} : vector<8x128xf32> to vector<1x32xf32>
    %128 = vector.extract_strided_slice %121 {offsets = [6, 0], sizes = [1, 32], strides = [1, 1]} : vector<8x128xf32> to vector<1x32xf32>
    %129 = vector.extract_strided_slice %121 {offsets = [7, 0], sizes = [1, 32], strides = [1, 1]} : vector<8x128xf32> to vector<1x32xf32>
    %130 = arith.truncf %118 : vector<8x32xf32> to vector<8x32xbf16>
    %131 = vector.extract_strided_slice %120 {offsets = [0, 0], sizes = [32, 96], strides = [1, 1]} : vector<32x384xbf16> to vector<32x96xbf16>
    %cst_30 = arith.constant dense<0.000000e+00> : vector<8x96xf32>
    %132 = tpu.matmul %130, %131, %cst_30 {dimension_numbers = #tpu.dot_dimension_numbers<[1], [0], [0], [1], [0, 0, 1, 1], [], []>} : vector<8x32xbf16>, vector<32x96xbf16>, vector<8x96xf32> -> vector<8x96xf32>
    %133 = vector.broadcast %122 : vector<1x96xf32> to vector<8x96xf32>
    %134 = arith.addf %132, %133 : vector<8x96xf32>
    %135 = vector.extract_strided_slice %134 {offsets = [0, 0], sizes = [8, 32], strides = [1, 1]} : vector<8x96xf32> to vector<8x32xf32>
    %136 = vector.extract_strided_slice %134 {offsets = [0, 32], sizes = [8, 32], strides = [1, 1]} : vector<8x96xf32> to vector<8x32xf32>
    %137 = vector.extract_strided_slice %134 {offsets = [0, 64], sizes = [8, 32], strides = [1, 1]} : vector<8x96xf32> to vector<8x32xf32>
    %138 = vector.extract_strided_slice %135 {offsets = [7, 0], sizes = [1, 32], strides = [1, 1]} : vector<8x32xf32> to vector<1x32xf32>
    %139 = arith.truncf %138 : vector<1x32xf32> to vector<1x32xbf16>
    %140 = arith.truncf %136 : vector<8x32xf32> to vector<8x32xbf16>
    %cst_31 = arith.constant dense<0.000000e+00> : vector<1x8xf32>
    %141 = tpu.matmul %139, %140, %cst_31 {dimension_numbers = #tpu.dot_dimension_numbers<[1], [1], [0], [0], [0, 0, 1, 0], [], []>} : vector<1x32xbf16>, vector<8x32xbf16>, vector<1x8xf32> -> vector<1x8xf32>
    %cst_32 = arith.constant dense<0xFF800000> : vector<1xf32>
    %142 = vector.multi_reduction <maximumf>, %141, %cst_32 [1] : vector<1x8xf32> to vector<1xf32>
    %143 = vector.shape_cast %142 : vector<1xf32> to vector<1x1xf32>
    %144 = vector.broadcast %143 : vector<1x1xf32> to vector<1x8xf32>
    %145 = arith.subf %141, %144 : vector<1x8xf32>
    %146 = math.exp %145 : vector<1x8xf32>
    %cst_33 = arith.constant dense<0.000000e+00> : vector<1xf32>
    %147 = vector.multi_reduction <add>, %146, %cst_33 [1] : vector<1x8xf32> to vector<1xf32>
    %148 = vector.shape_cast %147 : vector<1xf32> to vector<1x1xf32>
    %149 = tpu.reciprocal %148 {approx = true} : vector<1x1xf32> -> vector<1x1xf32>
    %150 = vector.broadcast %149 : vector<1x1xf32> to vector<1x8xf32>
    %151 = arith.mulf %146, %150 : vector<1x8xf32>
    %152 = arith.truncf %151 : vector<1x8xf32> to vector<1x8xbf16>
    %153 = arith.truncf %137 : vector<8x32xf32> to vector<8x32xbf16>
    %cst_34 = arith.constant dense<0.000000e+00> : vector<1x32xf32>
    %154 = tpu.matmul %152, %153, %cst_34 {dimension_numbers = #tpu.dot_dimension_numbers<[1], [0], [0], [1], [0, 0, 1, 1], [], []>} : vector<1x8xbf16>, vector<8x32xbf16>, vector<1x32xf32> -> vector<1x32xf32>
    %155 = arith.truncf %154 : vector<1x32xf32> to vector<1x32xbf16>
    %156 = vector.extract_strided_slice %120 {offsets = [0, 96], sizes = [32, 32], strides = [1, 1]} : vector<32x384xbf16> to vector<32x32xbf16>
    %cst_35 = arith.constant dense<0.000000e+00> : vector<1x32xf32>
    %157 = tpu.matmul %155, %156, %cst_35 {dimension_numbers = #tpu.dot_dimension_numbers<[1], [0], [0], [1], [0, 0, 1, 1], [], []>} : vector<1x32xbf16>, vector<32x32xbf16>, vector<1x32xf32> -> vector<1x32xf32>
    %158 = arith.addf %157, %123 : vector<1x32xf32>
    %159 = vector.extract_strided_slice %118 {offsets = [7, 0], sizes = [1, 32], strides = [1, 1]} : vector<8x32xf32> to vector<1x32xf32>
    %160 = arith.addf %159, %158 : vector<1x32xf32>
    %cst_36 = arith.constant dense<0.000000e+00> : vector<1xf32>
    %161 = vector.multi_reduction <add>, %160, %cst_36 [1] : vector<1x32xf32> to vector<1xf32>
    %162 = vector.shape_cast %161 : vector<1xf32> to vector<1x1xf32>
    %cst_37 = arith.constant 3.200000e+01 : f32
    %163 = vector.broadcast %cst_37 : f32 to vector<1x1xf32>
    %164 = arith.divf %162, %163 : vector<1x1xf32>
    %165 = vector.broadcast %164 : vector<1x1xf32> to vector<1x32xf32>
    %166 = arith.subf %160, %165 : vector<1x32xf32>
    %167 = arith.mulf %166, %166 : vector<1x32xf32>
    %cst_38 = arith.constant dense<0.000000e+00> : vector<1xf32>
    %168 = vector.multi_reduction <add>, %167, %cst_38 [1] : vector<1x32xf32> to vector<1xf32>
    %169 = vector.shape_cast %168 : vector<1xf32> to vector<1x1xf32>
    %cst_39 = arith.constant 3.200000e+01 : f32
    %170 = vector.broadcast %cst_39 : f32 to vector<1x1xf32>
    %171 = arith.divf %169, %170 : vector<1x1xf32>
    %172 = vector.broadcast %164 : vector<1x1xf32> to vector<1x32xf32>
    %173 = arith.subf %160, %172 : vector<1x32xf32>
    %cst_40 = arith.constant 9.99999974E-6 : f32
    %174 = vector.broadcast %cst_40 : f32 to vector<1x1xf32>
    %175 = arith.addf %171, %174 : vector<1x1xf32>
    %176 = math.rsqrt %175 : vector<1x1xf32>
    %177 = vector.broadcast %176 : vector<1x1xf32> to vector<1x32xf32>
    %178 = arith.mulf %173, %177 : vector<1x32xf32>
    %179 = arith.mulf %178, %126 : vector<1x32xf32>
    %180 = arith.addf %179, %127 : vector<1x32xf32>
    %181 = arith.truncf %180 : vector<1x32xf32> to vector<1x32xbf16>
    %182 = vector.extract_strided_slice %120 {offsets = [0, 128], sizes = [32, 128], strides = [1, 1]} : vector<32x384xbf16> to vector<32x128xbf16>
    %cst_41 = arith.constant dense<0.000000e+00> : vector<1x128xf32>
    %183 = tpu.matmul %181, %182, %cst_41 {dimension_numbers = #tpu.dot_dimension_numbers<[1], [0], [0], [1], [0, 0, 1, 1], [], []>} : vector<1x32xbf16>, vector<32x128xbf16>, vector<1x128xf32> -> vector<1x128xf32>
    %184 = arith.addf %183, %124 : vector<1x128xf32>
    %cst_42 = arith.constant 0.000000e+00 : f32
    %185 = vector.broadcast %cst_42 : f32 to vector<1x128xf32>
    %186 = arith.maximumf %184, %185 : vector<1x128xf32>
    %187 = arith.truncf %186 : vector<1x128xf32> to vector<1x128xbf16>
    %188 = vector.extract_strided_slice %120 {offsets = [0, 256], sizes = [32, 128], strides = [1, 1]} : vector<32x384xbf16> to vector<32x128xbf16>
    %cst_43 = arith.constant dense<0.000000e+00> : vector<1x32xf32>
    %189 = tpu.matmul %187, %188, %cst_43 {dimension_numbers = #tpu.dot_dimension_numbers<[1], [1], [0], [0], [0, 0, 1, 0], [], []>} : vector<1x128xbf16>, vector<32x128xbf16>, vector<1x32xf32> -> vector<1x32xf32>
    %190 = arith.addf %189, %125 : vector<1x32xf32>
    %191 = arith.addf %180, %190 : vector<1x32xf32>
    %cst_44 = arith.constant dense<0.000000e+00> : vector<1xf32>
    %192 = vector.multi_reduction <add>, %191, %cst_44 [1] : vector<1x32xf32> to vector<1xf32>
    %193 = vector.shape_cast %192 : vector<1xf32> to vector<1x1xf32>
    %cst_45 = arith.constant 3.200000e+01 : f32
    %194 = vector.broadcast %cst_45 : f32 to vector<1x1xf32>
    %195 = arith.divf %193, %194 : vector<1x1xf32>
    %196 = vector.broadcast %195 : vector<1x1xf32> to vector<1x32xf32>
    %197 = arith.subf %191, %196 : vector<1x32xf32>
    %198 = arith.mulf %197, %197 : vector<1x32xf32>
    %cst_46 = arith.constant dense<0.000000e+00> : vector<1xf32>
    %199 = vector.multi_reduction <add>, %198, %cst_46 [1] : vector<1x32xf32> to vector<1xf32>
    %200 = vector.shape_cast %199 : vector<1xf32> to vector<1x1xf32>
    %cst_47 = arith.constant 3.200000e+01 : f32
    %201 = vector.broadcast %cst_47 : f32 to vector<1x1xf32>
    %202 = arith.divf %200, %201 : vector<1x1xf32>
    %203 = vector.broadcast %195 : vector<1x1xf32> to vector<1x32xf32>
    %204 = arith.subf %191, %203 : vector<1x32xf32>
    %cst_48 = arith.constant 9.99999974E-6 : f32
    %205 = vector.broadcast %cst_48 : f32 to vector<1x1xf32>
    %206 = arith.addf %202, %205 : vector<1x1xf32>
    %207 = math.rsqrt %206 : vector<1x1xf32>
    %208 = vector.broadcast %207 : vector<1x1xf32> to vector<1x32xf32>
    %209 = arith.mulf %204, %208 : vector<1x32xf32>
    %210 = arith.mulf %209, %128 : vector<1x32xf32>
    %211 = arith.addf %210, %129 : vector<1x32xf32>
    %212 = arith.truncf %211 : vector<1x32xf32> to vector<1x32xbf16>
    %213 = vector.extract_strided_slice %0 {offsets = [80, 0], sizes = [32, 128], strides = [1, 1]} : vector<112x128xbf16> to vector<32x128xbf16>
    %cst_49 = arith.constant dense<0.000000e+00> : vector<1x128xf32>
    %214 = tpu.matmul %212, %213, %cst_49 {dimension_numbers = #tpu.dot_dimension_numbers<[1], [0], [0], [1], [0, 0, 1, 1], [], []>} : vector<1x32xbf16>, vector<32x128xbf16>, vector<1x128xf32> -> vector<1x128xf32>
    %215 = vector.extract_strided_slice %1 {offsets = [16, 0], sizes = [1, 128], strides = [1, 1]} : vector<17x128xf32> to vector<1x128xf32>
    %216 = arith.addf %214, %215 : vector<1x128xf32>
    %cst_50 = arith.constant dense<0xFF800000> : vector<1xf32>
    %217 = vector.multi_reduction <maximumf>, %216, %cst_50 [1] : vector<1x128xf32> to vector<1xf32>
    %218 = vector.shape_cast %217 : vector<1xf32> to vector<1x1xf32>
    %219 = vector.broadcast %218 : vector<1x1xf32> to vector<1x128xf32>
    %220 = arith.subf %216, %219 : vector<1x128xf32>
    %221 = math.exp %220 : vector<1x128xf32>
    %cst_51 = arith.constant dense<0.000000e+00> : vector<1xf32>
    %222 = vector.multi_reduction <add>, %221, %cst_51 [1] : vector<1x128xf32> to vector<1xf32>
    %223 = vector.shape_cast %222 : vector<1xf32> to vector<1x1xf32>
    %224 = tpu.reciprocal %223 : vector<1x1xf32> -> vector<1x1xf32>
    %225 = vector.broadcast %224 : vector<1x1xf32> to vector<1x128xf32>
    %226 = arith.mulf %221, %225 : vector<1x128xf32>
    %c0_52 = arith.constant 0 : index
    %c0_53 = arith.constant 0 : index
    %227 = vector.load %arg4[%c0_52, %c0_53] : memref<1x128xf32, #tpu.memory_space<vmem>>, vector<1x128xf32>
    tpu.vector_store %arg4[%c0_52, %c0_53], %226 {strides = array<i32>} : memref<1x128xf32, #tpu.memory_space<vmem>>, vector<1x128xf32>,
    return
  }
}

</mosaic_0001>

<bundles_post_ra>
// kernel: _lambda_.1
= control target key start
LH: loop header
LB: loop body
LE: loop exit
PB: predicated region body
PF: predicated region fallthrough
CT: control target
= control target key end

     0   :  { %9 = vsyncpa [#allocation3], 0  ;;  %s1575_s0 = inlined_call_operand.vmem [shape: s32[8,1], index: 0, kind: input, shape index: {}]   ;;  %s1576_s1 = inlined_call_operand.hbm [shape: bf16[2,32,384], index: 1, kind: input, shape index: {}]   ;;  %s1577_s2 = inlined_call_operand.hbm [shape: bf16[112,128], index: 2, kind: input, shape index: {}]   ;;  %s1578_s3 = inlined_call_operand.hbm [shape: f32[17,128], index: 3, kind: input, shape index: {}]   ;;  %s1579_s4 = inlined_call_operand.hbm [shape: f32[1,128], index: 4, kind: output, shape index: {}]  }
   0x1   :  { %10 = vsyncpa [#allocation6], 0 }
   0x2   :  { %11 = vsyncpa [#allocation4], 0  ;;  %s1379_s15 = smov [#allocation5]  }
   0x3   :  { %s31_s16 = sshll.u32 %s1379_s15, 4  ;;  %s32_s16 = int_to_ptr.vmem [resolvable:$true] %s31_s16 }
   0x4   :  { %s1301_s17 = scalar_lea.vmem %s32_s16, 896  ;;  %p1306_p1 = scmp.lt.s32.totalorder %s32_s16, %s32_s16 }
   0x5   :  { %p1302_p0 = scmp.ne.s32.totalorder %s32_s16, %s1301_s17  ;;  %p1307_p2 = scmp.lt.s32.totalorder %s1301_s17, %s1301_s17 }
   0x7   :  { %p1308_p3 = por %p1307_p2, %p1306_p1 }
   0x9   :  { %p1309_p4 = pnand %p1308_p3, %p1302_p0 }
   0xb   :  { %1312 = shalt.err (!%p1309_p4)
}
   0xc   :  { %s1380_s18 = smov 64   ;;  %s1381_s19 = smov 4  }
   0xd   :  { %37 = dma.hbm_to_vmem [thread:$0]  %s1577_s2, 896, %s32_s16, [#allocation6], %s1380_s18, %s1380_s18, %s1381_s19  }
   0xe   :  { %s1382_s22 = smov [#allocation2]  }
   0xf   :  { %s19_s23 = sshll.u32 %s1382_s22, 4  ;;  %s20_s23 = int_to_ptr.vmem [resolvable:$true] %s19_s23 }
  0x10   :  { %s1321_s24 = scalar_lea.vmem %s20_s23, 1536  ;;  %p1326_p6 = scmp.lt.s32.totalorder %s20_s23, %s20_s23 }
  0x11   :  { %p1322_p5 = scmp.ne.s32.totalorder %s20_s23, %s1321_s24  ;;  %p1327_p7 = scmp.lt.s32.totalorder %s1321_s24, %s1321_s24 }
  0x13   :  { %p1328_p8 = por %p1327_p7, %p1326_p6 }
  0x15   :  { %p1329_p9 = pnand %p1328_p8, %p1322_p5 }
  0x17   :  { %1332 = shalt.err (!%p1329_p9)
}
  0x18   :  { %s1383_s25 = smov 192   ;;  %s1384_s26 = smov 12  }
  0x19   :  { %25 = dma.hbm_to_vmem [thread:$0]  %s1576_s1, 1536, %s20_s23, [#allocation3], %s1383_s25, %s1383_s25, %s1384_s26  }
  0x1a   :  { %s1385_s29 = smov [#allocation7]  }
  0x1b   :  { %s43_s30 = sshll.u32 %s1385_s29, 4  ;;  %s44_s30 = int_to_ptr.vmem [resolvable:$true] %s43_s30 }
  0x1c   :  { %s1341_s2 = scalar_lea.vmem %s44_s30, 384  ;;  %p1346_p11 = scmp.lt.s32.totalorder %s44_s30, %s44_s30 }
  0x1d   :  { %p1342_p10 = scmp.ne.s32.totalorder %s44_s30, %s1341_s2  ;;  %p1347_p12 = scmp.lt.s32.totalorder %s1341_s2, %s1341_s2 }
  0x1f   :  { %p1348_p13 = por %p1347_p12, %p1346_p11 }
  0x21   :  { %p1349_p0 = pnand %p1348_p13, %p1342_p10 }
  0x23   :  { %1352 = shalt.err (!%p1349_p0)
}
  0x24   :  { %s1386_s5 = smov 128   ;;  %s1387_s6 = smov 8  }
  0x25   :  { %49 = dma.hbm_to_vmem [thread:$0]  %s1578_s3, 384, %s44_s30, [#allocation6], %s1386_s5, %s1386_s5, %s1387_s6  }
  0x26   :  { %1373 = dma.done.wait [#allocation3], 1536  }
  0x27   :  { %1374 = vsyncadd [#allocation3], 4294965760 }
  0x28   :  { %1375 = dma.done.wait [#allocation6], 1280  }
  0x29   :  { %1376 = vsyncadd [#allocation6], 4294966016  ;;  %v1388_v0 = vmov 0   ;;  %v1389_v1 = vmov 0.0   ;;  %v77_v2 = vld [vmem:[%s1575_s0] sm:$0xff]  ;;  %vm1390_vm0 = vmmov 0   ;;  %v78_v9 = vlaneseq }
  0x2a   :  { %1249 = vset.pattern.permute.xlu0 %v1388_v0  ;;  %1124 = vmatprep.subr.bf16.mxu0 %v1389_v1  ;;  %v1250_v3 = vld [vmem:[#allocation5 + $0x20] sm:$0xff]   ;;  %v1251_v4 = vld [vmem:[#allocation5 + $0x18] sm:$0xff]   ;;  %v1252_v5 = vld [vmem:[#allocation5 + $0x10] sm:$0xff]   ;;  %vm122_vm4 = vcmask 654336   ;;  %vm192_vm5 = vcmask 261120   ;;  %s1391_s0 = smov 96  }
  0x2b   :  { %1138 = vmatprep.subr.bf16.mxu1 %v1389_v1  ;;  %83 = vperm.xlu0 %1249, %v77_v2   ;;  %v1440_v6 = vld [vmem:[#allocation2 + $0x18] ss:$12 sps:$4 sm:$0xff]   ;;  %v1253_v7 = vld [vmem:[#allocation5 + $0x8] sm:$0xff]   ;;  %v1448_v10 = vshrl.u32 %v78_v9, 7  ;;  %v79_v11 = vand.u32 127, %v78_v9  ;;  %vm305_vm6 = vcmask 1043456  }
  0x2c   :  { %1134 = vmatprep.mubr.msk.bf16.mxu0 %vm1390_vm0, %v1389_v1  ;;  %1142 = vmatprep.mubr.msk.bf16.mxu1 %vm1390_vm0, %v1389_v1  ;;  %v1254_v8 = vld [vmem:[#allocation5] sm:$0xff]   ;;  %v1463_v23 = vld [vmem:[#allocation7] sm:$0xff]  ;;  %vm287_vm8 = vcmask 64512   ;;  %s1392_s3 = smov 32   ;;  %vm689_vm9 = vcmask 57344   ;;  %vm807_vm10 = vcmask 261127  }
  0x2d   :  { %1125 = vmatpush3.bf16.msra.mxu0 %v1250_v3  ;;  %1139 = vmatpush3.bf16.msra.mxu1 %v1440_v6  ;;  %v86_v12 = vadd.s32 64, %v1448_v10  ;;  %v1258_v16 = vld [vmem:[#allocation2] ss:$12 sps:$4 sm:$0xff]   ;;  %v178_v22 = vsub.s32 0, %v1448_v10  ;;  %vm166_vm7 = vcmp.le.s32.totalorder %v79_v11, %v1448_v10  ;;  %v1257_v51 = vld [vmem:[#allocation2 + $0x1c] ss:$12 sps:$4 sm:$0xff]  }
  0x2e   :  { %1126 = vmatprep.subr.bf16.mxu0 %v1389_v1  ;;  %1140 = vmatprep.subr.bf16.mxu1 %v1389_v1  ;;  %v1260_v53 = vld [vmem:[#allocation2 + $0x4] ss:$12 sps:$4 sm:$0xff]   ;;  %v352_v59 = vsub.s32 1, %v1448_v10  ;;  %vm1022_vm11 = vcmask 1040384   ;;  %s1393_s10 = smov [#allocation8]  }
  0x2f   :  { %vm87_vm1 = vcmp.eq.s32.totalorder %v79_v11, %v86_v12  ;;  %v179_v24 = vrot.slane %v1463_v23, %v178_v22  ;;  %s1041_s11 = sshll.u32 %s1393_s10, 4  ;;  %s1042_s11 = int_to_ptr.vmem [resolvable:$true] %s1041_s11 }
  0x30   :  { %v353_v60 = vrot.slane %v1463_v23, %v352_v59  ;;  %s1353_s12 = scalar_lea.vmem %s1042_s11, 16  ;;  %s1357_s13 = scalar_lea.vmem %s1042_s11, 32 }
  0x31   :  { %1127 = vmatpush3.bf16.msra.mxu0 %v1251_v4  ;;  %1141 = vmatpush3.bf16.msra.mxu1 %v1258_v16  ;;  %p1354_p1 = scmp.ne.s32.totalorder %s1042_s11, %s1353_s12  ;;  %p1358_p2 = scmp.lt.s32.totalorder %s1042_s11, %s1042_s11 }
  0x32   :  { %1128 = vmatprep.subr.bf16.mxu0 %v1389_v1  ;;  %1146 = vmatprep.subr.bf16.mxu1 %v1389_v1  ;;  %p1359_p3 = scmp.lt.s32.totalorder %s1357_s13, %s1353_s12 }
  0x34   :  { %p1360_p4 = por %p1359_p3, %p1358_p2 }
  0x35   :  { %1129 = vmatpush3.bf16.msra.mxu0 %v1252_v5 }
  0x36   :  { %1130 = vmatprep.subr.bf16.mxu0 %v1389_v1  ;;  %p1361_p5 = pnand %p1360_p4, %p1354_p1 }
  0x39   :  { %1131 = vmatpush3.bf16.msra.mxu0 %v1253_v7 }
  0x3a   :  { %1132 = vmatprep.subr.bf16.mxu0 %v1389_v1 }
  0x3d   :  { %1133 = vmatpush3.bf16.msra.mxu0 %v1254_v8 }
  0x3e   :  { %1158 = vmatprep.subr.bf16.mxu0 %v1389_v1 }
  0xa6   :  { %v84_v13 = vpop.permute.xlu0 %83 }
  0xa7   :  { %vm85_vm2 = vcmp.eq.s32.totalorder %v79_v11, %v84_v13  ;;  %v1261_v11 = vld [vmem:[#allocation2 + $0x20] ss:$12 sps:$4 sm:$0xff]  }
  0xa8   :  { %vm88_vm3 = vmor %vm85_vm2, %vm87_vm1 }
  0xa9   :  { %v1051_v14 = vsel %vm88_vm3, 1.0, %v1389_v1 }
  0xaa   :  { %v91_v15 = vpack.c.bf16 %v1051_v14, %v1051_v14 }
  0xac   :  { %1135 = vmatmul.mubr.msk.bf16.vlgmr.msra.gmra.mxu0 %vm122_vm4, %v91_v15  ;;  %v420_v15 = vsub.s32 4, %v1448_v10 }
  0xad   :  { %1162 = vmatprep.mubr.msk.bf16.mxu0 %vm1390_vm0, %v1389_v1 }
 0x16c   :  { %v1455_v17 = vpop.f32.mrf.mxu0 }
 0x16d   :  { %v175_v18 = vpack.c.bf16 %v1455_v17, %v1455_v17 }
 0x16e   :  { %v1136_v19 = vpop.f32.mrf.mxu0 }
 0x16f   :  { %1143 = vmatmul.mubr.msk.bf16.vlgmr.msra.gmra.mxu1 %vm192_vm5, %v175_v18 }
 0x170   :  { %v163_v20 = vpop.f32.mrf.mxu0  ;;  %1148 = vmatprep.mubr.msk.bf16.mxu1 %vm1390_vm0, %v1389_v1 }
 0x172   :  { %v1137_v21 = vpop.f32.mrf.mxu0 }
 0x22f   :  { %v230_v25 = vpop.f32.mrf.mxu1 }
 0x230   :  { %v231_v26 = vadd.f32 %v230_v25, %v179_v24 }
 0x231   :  { %v1144_v27 = vpop.f32.mrf.mxu1 }
 0x232   :  { %v236_v28 = vpack.c.bf16 %v231_v26, %v231_v26  ;;  %v1262_v26 = vld [vmem:[#allocation2 + $0x8] ss:$12 sps:$4 sm:$0xff]   ;;  %v431_v27 = vsub.s32 2, %v1448_v10 }
 0x233   :  { %v233_v29 = vpop.f32.mrf.mxu1 }
 0x234   :  { %238 = vrot.lane.b32.xlu0 %v236_v28, %s1391_s0 }
 0x235   :  { %v1145_v30 = vpop.f32.mrf.mxu1 }
 0x238   :  { %300 = vrot.lane.b32.xlu0 %v236_v28, %s1380_s18 }
 0x23c   :  { %354 = vrot.lane.b32.xlu0 %v1258_v16, %s1392_s3  ;;  %v425_v16 = vsub.s32 5, %v1448_v10 }
 0x23e   :  { %v426_v20 = vrot.slane %v1463_v23, %v425_v16 }
 0x2a6   :  { %v239_v31 = vpop.permute.xlu0 %238 }
 0x2a7   :  { %v244_v32 = vsel %vm192_vm5, %v239_v31, 0 }
 0x2a8   :  { %1147 = vmatpush3.bf16.xpose.msra.mxu1 %v244_v32 }
 0x2a9   :  { %1152 = vmatprep.subr.bf16.mxu1 %v1389_v1 }
 0x2aa   :  { %v301_v33 = vpop.permute.xlu0 %300 }
 0x2ab   :  { %v307_v34 = vsel %vm305_vm6, %v301_v33, 0 }
 0x2ae   :  { %v355_v48 = vpop.permute.xlu0 %354 }
 0x2af   :  { %1149 = vmatmul.mubr.msk.bf16.vlgmr.msra.gmra.mxu1 %vm192_vm5, %v236_v28  ;;  %v432_v28 = vrot.slane %v1463_v23, %v431_v27 }
 0x2b0   :  { %1153 = vmatpush3.bf16.msra.mxu1 %v307_v34  ;;  %1154 = vmatprep.mubr.msk.bf16.mxu1 %vm1390_vm0, %v1389_v1 }
 0x2b1   :  { %1166 = vmatprep.subr.bf16.mxu1 %v1389_v1 }
 0x36f   :  { %v280_v35 = vpop.f32.mrf.mxu1 }
 0x370   :  { %v286_v36 = vsel %vm166_vm7, %v280_v35, -1e+30 }
 0x371   :  { %v1150_v37 = vpop.f32.mrf.mxu1  ;;  %v288_v38 = vsel %vm287_vm8, %v286_v36, -inf }
 0x372   :  { %289 = vmax.xlane.f32.xlu1 %v288_v38 }
 0x373   :  { %v283_v39 = vpop.f32.mrf.mxu1 }
 0x375   :  { %v1151_v40 = vpop.f32.mrf.mxu1 }
 0x3fb   :  { %v290_v41 = vpop.xlane.xlu1 %289 }
 0x3fc   :  { %v291_v42 = vsub.f32 %v286_v36, %v290_v41  ;;  %v488_v36 = vsub.s32 3, %v1448_v10 }
 0x3fe   :  { %v292_v43 = vmul.f32 1.442695, %v291_v42  ;;  %v489_v37 = vrot.slane %v1463_v23, %v488_v36 }
 0x400   :  { %1273 = vpow2.f32 %v292_v43 }
 0x40d   :  { %v1274_v44 = vpop.eup %1273 }
 0x40e   :  { %v294_v45 = vsel %vm287_vm8, %v1274_v44, 0.0 }
 0x40f   :  { %295 = vadd.xlane.f32.xlu1 %v294_v45 }
 0x420   :  { %356 = vrot.lane.b32.xlu1 %v1440_v6, %s1392_s3 }
 0x498   :  { %v296_v46 = vpop.xlane.xlu1 %295 }
 0x499   :  { %1275 = vrcp.f32 %v296_v46 }
 0x49c   :  { %v357_v47 = vpop.permute.xlu1 %356 }
 0x49d   :  { %1159 = vmatpush3.bf16.msra.mxu0 %v357_v47 }
 0x49e   :  { %1160 = vmatprep.subr.bf16.mxu0 %v1389_v1 }
 0x4a1   :  { %1161 = vmatpush3.bf16.msra.mxu0 %v355_v48 }
 0x4a2   :  { %1174 = vmatprep.subr.bf16.mxu0 %v1389_v1 }
 0x4a6   :  { %v1276_v49 = vpop.eup %1275 }
 0x4a7   :  { %v298_v50 = vmul.f32 %v1276_v49, %v1274_v44 }
 0x4a9   :  { %v299_v52 = vpack.c.bf16 %v298_v50, %v298_v50  ;;  %v1263_v50 = vld [vmem:[#allocation2 + $0x48] ss:$12 sps:$4 sm:$0xff]  }
 0x4ab   :  { %1155 = vmatmul.mubr.msk.bf16.vlgmr.msra.gmra.mxu1 %vm287_vm8, %v299_v52 }
 0x4ac   :  { %1167 = vmatpush3.bf16.msra.mxu1 %v1257_v51  ;;  %1170 = vmatprep.mubr.msk.bf16.mxu1 %vm1390_vm0, %v1389_v1  ;;  %v1265_v51 = vld [vmem:[#allocation2 + $0x30] ss:$12 sps:$4 sm:$0xff]  }
 0x4ad   :  { %1168 = vmatprep.subr.bf16.mxu1 %v1389_v1 }
 0x4b0   :  { %1169 = vmatpush3.bf16.msra.mxu1 %v1260_v53 }
 0x4b1   :  { %1182 = vmatprep.subr.bf16.mxu1 %v1389_v1 }
 0x56b   :  { %v343_v54 = vpop.f32.mrf.mxu1 }
 0x56c   :  { %v349_v55 = vpack.c.bf16 %v343_v54, %v343_v54 }
 0x56d   :  { %v1156_v56 = vpop.f32.mrf.mxu1 }
 0x56e   :  { %1163 = vmatmul.mubr.msk.bf16.vlgmr.msra.gmra.mxu0 %vm192_vm5, %v349_v55  ;;  %v558_v55 = vsub.s32 6, %v1448_v10  ;;  %v563_v56 = vsub.s32 7, %v1448_v10 }
 0x56f   :  { %v346_v57 = vpop.f32.mrf.mxu1  ;;  %1178 = vmatprep.mubr.msk.bf16.mxu0 %vm1390_vm0, %v1389_v1  ;;  %1175 = vmatpush3.bf16.xpose.msra.mxu0 %v1261_v11 }
 0x570   :  { %1176 = vmatprep.subr.bf16.mxu0 %v1389_v1  ;;  %v559_v57 = vrot.slane %v1463_v23, %v558_v55 }
 0x571   :  { %v1157_v58 = vpop.f32.mrf.mxu1 }
 0x577   :  { %1177 = vmatpush3.bf16.xpose.msra.mxu0 %v1262_v26 }
 0x578   :  { %1196 = vmatprep.subr.bf16.mxu0 %v1389_v1 }
 0x62e   :  { %v397_v61 = vpop.f32.mrf.mxu0 }
 0x62f   :  { %v398_v62 = vadd.f32 %v397_v61, %v353_v60  ;;  %v564_v60 = vrot.slane %v1463_v23, %v563_v56 }
 0x630   :  { %v1164_v63 = vpop.f32.mrf.mxu0 }
 0x631   :  { %v403_v0 = vadd.f32 %v398_v62, %v1455_v17  ;;  %v421_v17 = vrot.slane %v1463_v23, %v420_v15 }
 0x632   :  { %v400_v2 = vpop.f32.mrf.mxu0 }
 0x633   :  { %v404_v3 = vsel %vm192_vm5, %v403_v0, 0.0 }
 0x634   :  { %405 = vadd.xlane.f32.xlu0 %v404_v3  ;;  %v1165_v4 = vpop.f32.mrf.mxu0 }
 0x6bd   :  { %v406_v5 = vpop.xlane.xlu0 %405 }
 0x6be   :  { %v408_v6 = vmul.f32 0.03125, %v406_v5 }
 0x6c0   :  { %v409_v7 = vsub.f32 %v403_v0, %v408_v6  ;;  %v1528_v0 = vld [vmem:[#allocation7 + $0x8] sm:$0xff] }
 0x6c1   :  { %v579_v2 = vrot.slane %v1528_v0, %v178_v22  ;;  %v758_v36 = vrot.slane %v1528_v0, 1  ;;  %v821_v56 = vrot.slane %v1528_v0, 5 }
 0x6c2   :  { %v410_v8 = vmul.f32 %v409_v7, %v409_v7 }
 0x6c4   :  { %v411_v9 = vsel %vm192_vm5, %v410_v8, 0.0 }
 0x6c5   :  { %412 = vadd.xlane.f32.xlu1 %v411_v9 }
 0x74e   :  { %v413_v12 = vpop.xlane.xlu1 %412 }
 0x74f   :  { %v414_v13 = vmul.f32 0.03125, %v413_v12 }
 0x751   :  { %v415_v14 = vadd.f32 1e-05, %v414_v13 }
 0x753   :  { %1277 = vrsqrt.f32 %v415_v14 }
 0x760   :  { %v1278_v18 = vpop.eup %1277 }
 0x761   :  { %v417_v19 = vmul.f32 %v1278_v18, %v409_v7 }
 0x763   :  { %v422_v21 = vmul.f32 %v421_v17, %v417_v19 }
 0x765   :  { %v427_v24 = vadd.f32 %v426_v20, %v422_v21 }
 0x767   :  { %v428_v25 = vpack.c.bf16 %v427_v24, %v427_v24 }
 0x769   :  { %1171 = vmatmul.mubr.msk.bf16.vlgmr.msra.gmra.mxu1 %vm192_vm5, %v428_v25 }
 0x76a   :  { %1186 = vmatprep.mubr.msk.bf16.mxu1 %vm1390_vm0, %v1389_v1  ;;  %1183 = vmatpush3.bf16.msra.mxu1 %v1263_v50 }
 0x76b   :  { %1184 = vmatprep.subr.bf16.mxu1 %v1389_v1 }
 0x76e   :  { %1185 = vmatpush3.bf16.msra.mxu1 %v1265_v51 }
 0x76f   :  { %1190 = vmatprep.subr.bf16.mxu1 %v1389_v1 }
 0x829   :  { %v478_v29 = vpop.f32.mrf.mxu1 }
 0x82a   :  { %v479_v30 = vadd.f32 %v478_v29, %v432_v28 }
 0x82b   :  { %v1172_v31 = vpop.f32.mrf.mxu1 }
 0x82c   :  { %v484_v32 = vmax.f32 %v479_v30, 0.0 }
 0x82d   :  { %v481_v33 = vpop.f32.mrf.mxu1 }
 0x82e   :  { %v485_v34 = vpack.c.bf16 %v484_v32, %v484_v32 }
 0x82f   :  { %v1173_v35 = vpop.f32.mrf.mxu1 }
 0x830   :  { %1179 = vmatmul.mubr.bf16.vlgmr.msra.gmra.mxu0 %v485_v34 }
 0x831   :  { %1198 = vmatprep.mubr.msk.bf16.mxu0 %vm1390_vm0, %v1389_v1 }
 0x8f0   :  { %v536_v38 = vpop.f32.mrf.mxu0 }
 0x8f1   :  { %v537_v39 = vadd.f32 %v536_v38, %v489_v37 }
 0x8f2   :  { %v1180_v40 = vpop.f32.mrf.mxu0 }
 0x8f3   :  { %v542_v41 = vadd.f32 %v537_v39, %v427_v24 }
 0x8f4   :  { %v539_v42 = vpop.f32.mrf.mxu0 }
 0x8f5   :  { %v543_v43 = vsel %vm192_vm5, %v542_v41, 0.0 }
 0x8f6   :  { %544 = vadd.xlane.f32.xlu0 %v543_v43  ;;  %v1181_v44 = vpop.f32.mrf.mxu0 }
 0x97f   :  { %v545_v45 = vpop.xlane.xlu0 %544 }
 0x980   :  { %v546_v46 = vmul.f32 0.03125, %v545_v45 }
 0x982   :  { %v547_v47 = vsub.f32 %v542_v41, %v546_v46 }
 0x984   :  { %v548_v48 = vmul.f32 %v547_v47, %v547_v47 }
 0x986   :  { %v549_v49 = vsel %vm192_vm5, %v548_v48, 0.0 }
 0x987   :  { %550 = vadd.xlane.f32.xlu0 %v549_v49 }
 0xa10   :  { %v551_v52 = vpop.xlane.xlu0 %550 }
 0xa11   :  { %v552_v53 = vmul.f32 0.03125, %v551_v52  ;;  %v1269_v52 = vld [vmem:[#allocation2 + $0x50] ss:$12 sps:$4 sm:$0xff]  }
 0xa13   :  { %v553_v54 = vadd.f32 1e-05, %v552_v53 }
 0xa15   :  { %1279 = vrsqrt.f32 %v553_v54 }
 0xa22   :  { %v1280_v58 = vpop.eup %1279 }
 0xa23   :  { %v555_v59 = vmul.f32 %v1280_v58, %v547_v47 }
 0xa25   :  { %v560_v61 = vmul.f32 %v559_v57, %v555_v59  ;;  %v824_v59 = vrot.slane %v1528_v0, 6 }
 0xa27   :  { %v1521_v62 = vadd.f32 %v564_v60, %v560_v61 }
 0xa29   :  { %v575_v63 = vpack.c.bf16 %v1521_v62, %v1521_v62 }
 0xa2b   :  { %1187 = vmatmul.mubr.msk.bf16.vlgmr.msra.gmra.mxu1 %vm192_vm5, %v575_v63 }
 0xa2c   :  { %1192 = vmatprep.mubr.msk.bf16.mxu1 %vm1390_vm0, %v1389_v1 }
 0xaeb   :  { %v629_v3 = vpop.f32.mrf.mxu1 }
 0xaec   :  { %v630_v4 = vadd.f32 %v629_v3, %v579_v2  ;;  %v1270_v3 = vld [vmem:[#allocation2 + $0x38] ss:$12 sps:$4 sm:$0xff]  }
 0xaed   :  { %v1188_v23 = vpop.f32.mrf.mxu1 }
 0xaee   :  { %v635_v5 = vpack.c.bf16 %v630_v4, %v630_v4  ;;  %v840_v4 = vrot.slane %v1528_v0, 2 }
 0xaef   :  { %v632_v6 = vpop.f32.mrf.mxu1 }
 0xaf0   :  { %641 = vrot.lane.b32.xlu0 %v635_v5, %s1391_s0  ;;  %v637_v11 = vshrl.u32 %v635_v5, 16 }
 0xaf1   :  { %v1189_v7 = vpop.f32.mrf.mxu1 }
 0xaf2   :  { %v639_v10 = vrot.slane %v637_v11, 3 }
 0xaf4   :  { %753 = vrot.lane.b32.xlu0 %v1263_v50, %s1392_s3  ;;  %v1267_v50 = vld [vmem:[#allocation2 + $0x4c] ss:$12 sps:$4 sm:$0xff]  }
 0xaf8   :  { %751 = vrot.lane.b32.xlu0 %v1265_v51, %s1392_s3  ;;  %v1268_v51 = vld [vmem:[#allocation2 + $0x34] ss:$12 sps:$4 sm:$0xff]  }
 0xb62   :  { %v642_v8 = vpop.permute.xlu0 %641 }
 0xb63   :  { %v647_v9 = vsel %vm192_vm5, %v642_v8, 0 }
 0xb64   :  { %1191 = vmatpush3.bf16.xpose.msra.mxu1 %v647_v9 }
 0xb65   :  { %1202 = vmatprep.subr.bf16.mxu1 %v1389_v1 }
 0xb66   :  { %v754_v21 = vpop.permute.xlu0 %753 }
 0xb6a   :  { %v752_v24 = vpop.permute.xlu0 %751 }
 0xb6b   :  { %1193 = vmatmul.mubr.msk.bf16.vlgmr.msra.gmra.mxu1 %vm192_vm5, %v639_v10  ;;  %v899_v10 = vrot.slane %v1528_v0, 3 }
 0xb6c   :  { %1206 = vmatprep.mubr.msk.bf16.mxu1 %vm1390_vm0, %v1389_v1  ;;  %1203 = vmatpush3.bf16.msra.mxu1 %v754_v21 }
 0xb6d   :  { %1204 = vmatprep.subr.bf16.mxu1 %v1389_v1 }
 0xb70   :  { %1205 = vmatpush3.bf16.msra.mxu1 %v752_v24 }
 0xb71   :  { %1218 = vmatprep.subr.bf16.mxu1 %v1389_v1 }
 0xc2b   :  { %v683_v22 = vpop.f32.mrf.mxu1 }
 0xc2c   :  { %v690_v12 = vsel %vm689_vm9, %v683_v22, -inf }
 0xc2d   :  { %691 = vmax.xlane.f32.xlu1 %v690_v12  ;;  %v1194_v13 = vpop.f32.mrf.mxu1 }
 0xc2f   :  { %v686_v14 = vpop.f32.mrf.mxu1 }
 0xc31   :  { %v1195_v15 = vpop.f32.mrf.mxu1 }
 0xcb6   :  { %v692_v16 = vpop.xlane.xlu1 %691 }
 0xcb7   :  { %v693_v17 = vsub.f32 %v683_v22, %v692_v16 }
 0xcb9   :  { %v694_v18 = vmul.f32 1.442695, %v693_v17 }
 0xcbb   :  { %1281 = vpow2.f32 %v694_v18 }
 0xcc8   :  { %v1282_v19 = vpop.eup %1281 }
 0xcc9   :  { %v696_v20 = vsel %vm689_vm9, %v1282_v19, 0.0 }
 0xcca   :  { %697 = vadd.xlane.f32.xlu1 %v696_v20 }
 0xcdb   :  { %702 = vrot.lane.b32.xlu1 %v635_v5, %s1380_s18 }
 0xd53   :  { %v698_v25 = vpop.xlane.xlu1 %697 }
 0xd54   :  { %1283 = vrcp.f32 %v698_v25 }
 0xd57   :  { %v703_v26 = vpop.permute.xlu1 %702 }
 0xd58   :  { %v708_v27 = vsel %vm305_vm6, %v703_v26, 0  ;;  %v1271_v26 = vld [vmem:[#allocation5 + $0x30] sm:$0xff]  }
 0xd59   :  { %1197 = vmatpush3.bf16.msra.mxu0 %v708_v27  ;;  %v1272_v27 = vld [vmem:[#allocation5 + $0x28] sm:$0xff]  }
 0xd5a   :  { %1210 = vmatprep.subr.bf16.mxu0 %v1389_v1 }
 0xd61   :  { %v1284_v28 = vpop.eup %1283 }
 0xd62   :  { %v700_v29 = vmul.f32 %v1284_v28, %v1282_v19 }
 0xd64   :  { %v701_v30 = vpack.c.bf16 %v700_v29, %v700_v29 }
 0xd66   :  { %1199 = vmatmul.mubr.msk.bf16.vlgmr.msra.gmra.mxu0 %vm287_vm8, %v701_v30 }
 0xd67   :  { %1214 = vmatprep.mubr.msk.bf16.mxu0 %vm1390_vm0, %v1389_v1  ;;  %1211 = vmatpush3.bf16.msra.mxu0 %v1267_v50 }
 0xd68   :  { %1212 = vmatprep.subr.bf16.mxu0 %v1389_v1 }
 0xd6b   :  { %1213 = vmatpush3.bf16.msra.mxu0 %v1268_v51 }
 0xd6c   :  { %1226 = vmatprep.subr.bf16.mxu0 %v1389_v1 }
 0xe26   :  { %v744_v31 = vpop.f32.mrf.mxu0 }
 0xe27   :  { %v750_v32 = vpack.c.bf16 %v744_v31, %v744_v31  ;;  %v958_v31 = vrot.slane %v1528_v0, 7 }
 0xe28   :  { %v1200_v33 = vpop.f32.mrf.mxu0 }
 0xe29   :  { %1207 = vmatmul.mubr.msk.bf16.vlgmr.msra.gmra.mxu1 %vm192_vm5, %v750_v32 }
 0xe2a   :  { %v747_v34 = vpop.f32.mrf.mxu0  ;;  %1222 = vmatprep.mubr.msk.bf16.mxu1 %vm1390_vm0, %v1389_v1  ;;  %1219 = vmatpush3.bf16.xpose.msra.mxu1 %v1269_v52 }
 0xe2b   :  { %1220 = vmatprep.subr.bf16.mxu1 %v1389_v1 }
 0xe2c   :  { %v1201_v35 = vpop.f32.mrf.mxu0 }
 0xe32   :  { %1221 = vmatpush3.bf16.xpose.msra.mxu1 %v1270_v3 }
 0xee9   :  { %v797_v37 = vpop.f32.mrf.mxu1 }
 0xeea   :  { %v798_v38 = vadd.f32 %v797_v37, %v758_v36 }
 0xeeb   :  { %v1208_v39 = vpop.f32.mrf.mxu1 }
 0xeec   :  { %v804_v40 = vrot.slane %v798_v38, 1  ;;  %v76_v39 = vld [vmem:[#allocation7 + $0x10] sm:$0x1] }
 0xeed   :  { %v800_v41 = vpop.f32.mrf.mxu1 }
 0xeee   :  { %v806_v42 = vadd.f32 %v804_v40, %v1521_v62 }
 0xeef   :  { %v1209_v43 = vpop.f32.mrf.mxu1 }
 0xef0   :  { %v808_v44 = vsel %vm807_vm10, %v806_v42, 0.0 }
 0xef1   :  { %809 = vadd.xlane.f32.xlu0 %v808_v44 }
 0xf7a   :  { %v810_v45 = vpop.xlane.xlu0 %809 }
 0xf7b   :  { %v811_v46 = vmul.f32 0.03125, %v810_v45 }
 0xf7d   :  { %v812_v47 = vsub.f32 %v806_v42, %v811_v46 }
 0xf7f   :  { %v813_v48 = vmul.f32 %v812_v47, %v812_v47 }
 0xf81   :  { %v814_v49 = vsel %vm807_vm10, %v813_v48, 0.0 }
 0xf82   :  { %815 = vadd.xlane.f32.xlu1 %v814_v49 }
0x100b   :  { %v816_v53 = vpop.xlane.xlu1 %815 }
0x100c   :  { %v817_v54 = vmul.f32 0.03125, %v816_v53 }
0x100e   :  { %v818_v55 = vadd.f32 1e-05, %v817_v54 }
0x1010   :  { %1285 = vrsqrt.f32 %v818_v55 }
0x101d   :  { %v1286_v57 = vpop.eup %1285 }
0x101e   :  { %v820_v58 = vmul.f32 %v1286_v57, %v812_v47 }
0x1020   :  { %v823_v60 = vmul.f32 %v821_v56, %v820_v58 }
0x1022   :  { %v826_v61 = vadd.f32 %v824_v59, %v823_v60 }
0x1024   :  { %v827_v62 = vpack.c.bf16 %v826_v61, %v826_v61 }
0x1026   :  { %v829_v63 = vshrl.u32 %v827_v62, 16 }
0x1028   :  { %v831_v2 = vrot.slane %v829_v63, 3 }
0x102a   :  { %1215 = vmatmul.mubr.msk.bf16.vlgmr.msra.gmra.mxu0 %vm192_vm5, %v831_v2 }
0x102b   :  { %1230 = vmatprep.mubr.msk.bf16.mxu0 %vm1390_vm0, %v1389_v1  ;;  %1227 = vmatpush3.bf16.msra.mxu0 %v1271_v26 }
0x102c   :  { %1228 = vmatprep.subr.bf16.mxu0 %v1389_v1 }
0x102f   :  { %1229 = vmatpush3.bf16.msra.mxu0 %v1272_v27 }
0x10ea   :  { %v879_v23 = vpop.f32.mrf.mxu0 }
0x10eb   :  { %v880_v5 = vadd.f32 %v879_v23, %v840_v4 }
0x10ec   :  { %v1216_v6 = vpop.f32.mrf.mxu0 }
0x10ed   :  { %v885_v7 = vmax.f32 %v880_v5, 0.0 }
0x10ee   :  { %v882_v8 = vpop.f32.mrf.mxu0 }
0x10ef   :  { %v886_v9 = vpack.c.bf16 %v885_v7, %v885_v7 }
0x10f0   :  { %v1217_v11 = vpop.f32.mrf.mxu0 }
0x10f1   :  { %1223 = vmatmul.mubr.bf16.vlgmr.msra.gmra.mxu1 %v886_v9 }
0x11b1   :  { %v935_v22 = vpop.f32.mrf.mxu1 }
0x11b2   :  { %v936_v12 = vadd.f32 %v935_v22, %v899_v10 }
0x11b3   :  { %v1224_v13 = vpop.f32.mrf.mxu1 }
0x11b4   :  { %v942_v14 = vrot.slane %v936_v12, 1 }
0x11b5   :  { %v938_v15 = vpop.f32.mrf.mxu1 }
0x11b6   :  { %v944_v16 = vadd.f32 %v942_v14, %v826_v61 }
0x11b7   :  { %v1225_v17 = vpop.f32.mrf.mxu1 }
0x11b8   :  { %v945_v18 = vsel %vm807_vm10, %v944_v16, 0.0 }
0x11b9   :  { %946 = vadd.xlane.f32.xlu0 %v945_v18 }
0x1242   :  { %v947_v19 = vpop.xlane.xlu0 %946 }
0x1243   :  { %v948_v20 = vmul.f32 0.03125, %v947_v19 }
0x1245   :  { %v949_v21 = vsub.f32 %v944_v16, %v948_v20 }
0x1247   :  { %v950_v24 = vmul.f32 %v949_v21, %v949_v21 }
0x1249   :  { %v951_v25 = vsel %vm807_vm10, %v950_v24, 0.0 }
0x124a   :  { %952 = vadd.xlane.f32.xlu0 %v951_v25 }
0x12d3   :  { %v953_v28 = vpop.xlane.xlu0 %952 }
0x12d4   :  { %v954_v29 = vmul.f32 0.03125, %v953_v28 }
0x12d6   :  { %v955_v30 = vadd.f32 1e-05, %v954_v29 }
0x12d8   :  { %1287 = vrsqrt.f32 %v955_v30 }
0x12e5   :  { %v1288_v32 = vpop.eup %1287 }
0x12e6   :  { %v957_v33 = vmul.f32 %v1288_v32, %v949_v21 }
0x12e8   :  { %v960_v34 = vmul.f32 %v958_v31, %v957_v33 }
0x12ea   :  { %v961_v35 = vadd.f32 %v960_v34, %v1528_v0 }
0x12ec   :  { %v962_v36 = vpack.c.bf16 %v961_v35, %v961_v35 }
0x12ee   :  { %v964_v37 = vshrl.u32 %v962_v36, 16 }
0x12f0   :  { %v966_v38 = vrot.slane %v964_v37, 3 }
0x12f2   :  { %1231 = vmatmul.mubr.msk.bf16.vlgmr.msra.gmra.mxu0 %vm192_vm5, %v966_v38 }
0x13b2   :  { %v1016_v40 = vpop.f32.mrf.mxu0 }
0x13b3   :  { %v1017_v1 = vadd.f32 %v1016_v40, %v76_v39 }
0x13b4   :  { %v1232_v41 = vpop.f32.mrf.mxu0 }
0x13b5   :  { %v1023_v42 = vsel %vm1022_vm11, %v1017_v1, -inf }
0x13b6   :  { %1024 = vmax.xlane.f32.xlu1 %v1023_v42  ;;  %v1019_v43 = vpop.f32.mrf.mxu0 }
0x13b8   :  { %v1233_v44 = vpop.f32.mrf.mxu0 }
0x143f   :  { %v1025_v45 = vpop.xlane.xlu1 %1024 }
0x1440   :  { %v1026_v46 = vsub.f32 %v1017_v1, %v1025_v45 }
0x1442   :  { %v1027_v47 = vmul.f32 1.442695, %v1026_v46 }
0x1444   :  { %1289 = vpow2.f32 %v1027_v47 }
0x1451   :  { %v1290_v48 = vpop.eup %1289 }
0x1452   :  { %v1029_v0 = vsel %vm1022_vm11, %v1290_v48, 0.0 }
0x1453   :  { %1030 = vadd.xlane.f32.xlu0 %v1029_v0 }
0x14dc   :  { %v1031_v49 = vpop.xlane.xlu0 %1030 }
0x14dd   :  { %1291 = vrcp.f32 %v1031_v49 }
0x14ea   :  { %v1292_v50 = vpop.eup %1291 }
0x14eb   :  { %v1033_v51 = vmul.f32 %v1292_v50, %v1290_v48 }
0x14ed   :  { %1034 = vst [vmem:[#allocation8] sm:$0x1] %v1033_v51 }
0x14ee   :  { %1364 = shalt.err (!%p1361_p5)
}
0x14ef   :  { %1044 = dma.vmem_to_hbm [thread:$0]  %s1042_s11, 16, %s1579_s4, [#allocation4]  }
0x14f0   :  { %1377 = dma.done.wait [#allocation4], 16  }
0x14f1   :  { %1378 = vsyncadd [#allocation4], 4294967280 }
0x14f2   :  { %1048 = vsyncpa [#allocation3], 1 }
0x14f3   :  { %1049 = vsyncpa [#allocation6], 1 }
0x14f4   :  { %1050 = vsyncpa [#allocation4], 1 }

</bundles_post_ra>
